<compile_context>
chip_gen: v5e
topology: v5e:2x2
jax: 0.10.0
libtpu: 0.0.40
codegen_flags: <defaults>
</compile_context>

<pallas_src>
import functools

import jax
import jax.numpy as jnp
from jax import lax
from jax.experimental import pallas as pl
from jax.experimental.pallas import tpu as pltpu


# ----------------------------------------------------------------------------
# Pallas kernel: the whole TCN for one batch element, layout (C, L).
# ----------------------------------------------------------------------------
def tcn_fused_kernel(x_ref, *refs, block_meta):
    """refs = flat per-block parameter refs followed by the output ref."""
    o_ref = refs[-1]
    params = refs[:-1]

    h = x_ref[0].astype(jnp.float32)                    # (C_in, L)
    L = h.shape[1]

    idx = 0
    for meta in block_meta:                             # static Python unroll
        k = meta["kernel_size"]
        d = meta["dilation"]
        pad = (k - 1) * d

        w1 = params[idx][...].astype(jnp.float32)       # (C_out, k*C_in)
        b1 = params[idx + 1][...].astype(jnp.float32)   # (C_out, 1)
        w2 = params[idx + 2][...].astype(jnp.float32)   # (C_out, k*C_out)
        b2 = params[idx + 3][...].astype(jnp.float32)   # (C_out, 1)
        idx += 4
        if meta["has_downsample"]:
            wd = params[idx][...].astype(jnp.float32)   # (C_out, C_in)
            bd = params[idx + 1][...].astype(jnp.float32)
            idx += 2

        x_in = h

        def causal_conv(inp, w_stacked, b):
            # inp: (C_in, L).  Left-pad time by (k-1)*d, gather the k
            # statically-shifted views as one im2col block, then do a SINGLE
            # MXU matmul with contraction k*C_in.
            c_in = inp.shape[0]
            inp_pad = jnp.concatenate(
                [jnp.zeros((c_in, pad), jnp.float32), inp], axis=1)  # (C_in, L+pad)
            im2col = jnp.concatenate(
                [inp_pad[:, kk * d: kk * d + L] for kk in range(k)],
                axis=0)                                              # (k*C_in, L)
            return jnp.dot(w_stacked, im2col,
                           preferred_element_type=jnp.float32) + b

        a = jnp.maximum(causal_conv(x_in, w1, b1), 0.0)  # conv1 + chomp + relu
        # dropout1: eval-mode identity
        a = jnp.maximum(causal_conv(a, w2, b2), 0.0)     # conv2 + chomp + relu
        # dropout2: eval-mode identity

        if meta["has_downsample"]:
            res = jnp.dot(wd, x_in, preferred_element_type=jnp.float32) + bd
        else:
            res = x_in
        h = jnp.maximum(a + res, 0.0)

    o_ref[0] = h.astype(o_ref.dtype)


# ----------------------------------------------------------------------------
# Wrapper: one pallas_call for the whole network, grid over batch.
# ----------------------------------------------------------------------------
def _stack_conv_weight(w_kio):
    # (K, C_in, C_out) -> (C_out, K*C_in), rows of the contraction ordered as
    # [tap0 channels..., tap1 channels..., ...] to match the kernel's im2col.
    K, C_in, C_out = w_kio.shape
    return jnp.transpose(w_kio, (2, 0, 1)).reshape(C_out, K * C_in)


def tcn_forward(x_ncl, blocks):
    """x_ncl: (N, C_in, L) in the PyTorch layout; returns (N, C_last, L)."""
    N, C_in, L = x_ncl.shape
    C_last = blocks[-1]["w1"].shape[-1]

    flat_params = []
    metas = []
    for blk in blocks:
        c_out = blk["w1"].shape[-1]
        flat_params += [_stack_conv_weight(blk["w1"]),
                        blk["b1"].reshape(c_out, 1),
                        _stack_conv_weight(blk["w2"]),
                        blk["b2"].reshape(c_out, 1)]
        has_ds = blk["wd"] is not None
        if has_ds:
            flat_params += [blk["wd"].T,                  # (C_out, C_in)
                            blk["bd"].reshape(c_out, 1)]
        metas.append(dict(kernel_size=blk["kernel_size"],
                          dilation=blk["dilation"],
                          has_downsample=has_ds))

    kern = functools.partial(tcn_fused_kernel, block_meta=tuple(metas))

    # Weights are tiny; each is brought whole into VMEM (same block every step).
    param_specs = [pl.BlockSpec(p.shape, lambda b: (0, 0)) for p in flat_params]

    return pl.pallas_call(
        kern,
        out_shape=jax.ShapeDtypeStruct((N, C_last, L), x_ncl.dtype),
        grid_spec=pltpu.PrefetchScalarGridSpec(
            num_scalar_prefetch=0,
            grid=(N,),
            in_specs=[pl.BlockSpec((1, C_in, L), lambda b: (b, 0, 0))] + param_specs,
            out_specs=pl.BlockSpec((1, C_last, L), lambda b: (b, 0, 0)),
        ),
        compiler_params=pltpu.CompilerParams(
            dimension_semantics=("parallel",)),
    )(x_ncl, *flat_params)


# ----------------------------------------------------------------------------
# Parameter init (deterministic, synthetic) matching the PyTorch TCN structure.
# ----------------------------------------------------------------------------
def init_tcn_params(key, num_input_channel, num_channels, num_block=None,
                    kernel_size=3):
    num_block = [1] * len(num_channels) if num_block is None else num_block
    blocks = []
    for i, c_out in enumerate(num_channels):
        dilation = 2 ** i
        level_in = num_input_channel if i == 0 else num_channels[i - 1]
        for j in range(num_block[i]):
            c_in = num_channels[i] if j > 0 else level_in
            key, k1, k2, k3, k4, k5, k6 = jax.random.split(key, 7)
            # effective (post weight_norm) conv weights, stored as (K, C_in, C_out)
            w1 = 0.01 * jax.random.normal(k1, (kernel_size, c_in, c_out), jnp.float32)
            b1 = 0.01 * jax.random.normal(k2, (c_out,), jnp.float32)
            w2 = 0.01 * jax.random.normal(k3, (kernel_size, c_out, c_out), jnp.float32)
            b2 = 0.01 * jax.random.normal(k4, (c_out,), jnp.float32)
            if c_in != c_out:
                wd = 0.01 * jax.random.normal(k5, (c_in, c_out), jnp.float32)
                bd = 0.01 * jax.random.normal(k6, (c_out,), jnp.float32)
            else:
                wd, bd = None, None
            blocks.append(dict(w1=w1, b1=b1, w2=w2, b2=b2, wd=wd, bd=bd,
                               dilation=dilation, kernel_size=kernel_size))
    return blocks


# ----------------------------------------------------------------------------
# Pure-JAX reference (independent path through lax.conv) for validation.
# ----------------------------------------------------------------------------
def _ref_causal_conv(x_ncl, w_kio, b, dilation):
    w = jnp.transpose(w_kio, (2, 1, 0))          # (C_out, C_in, K)
    p = (w_kio.shape[0] - 1) * dilation
    y = lax.conv_general_dilated(x_ncl, w, window_strides=(1,),
                                 padding=[(p, p)], rhs_dilation=(dilation,),
                                 dimension_numbers=("NCH", "OIH", "NCH"))
    return y[:, :, :x_ncl.shape[-1]] + b.reshape(1, -1, 1)   # chomp


def ref_tcn(x_ncl, blocks):
    x = x_ncl
    for blk in blocks:
        h = jax.nn.relu(_ref_causal_conv(x, blk["w1"], blk["b1"], blk["dilation"]))
        h = jax.nn.relu(_ref_causal_conv(h, blk["w2"], blk["b2"], blk["dilation"]))
        if blk["wd"] is not None:
            res = jnp.einsum("ncl,co->nol", x, blk["wd"]) + blk["bd"].reshape(1, -1, 1)
        else:
            res = x
        x = jax.nn.relu(h + res)
    return x


if __name__ == "__main__":
    key = jax.random.PRNGKey(0)
    k_param, k_x = jax.random.split(key)

    # TCN(num_input_channel=4, num_channels=[8, 16], kernel_size=3)
    blocks = init_tcn_params(k_param, num_input_channel=4,
                             num_channels=[8, 16], kernel_size=3)

    # PyTorch Conv1d input layout: (N, C, L)
    x = jax.random.normal(k_x, (2, 4, 16), jnp.float32)

    out = tcn_forward(x, blocks)
    out = jax.block_until_ready(out)

    ref = jax.block_until_ready(ref_tcn(x, blocks))
    assert out.shape == (2, 16, 16), out.shape
    assert jnp.allclose(out, ref, atol=1e-5, rtol=1e-5), \
        float(jnp.max(jnp.abs(out - ref)))

    print("KERNEL_OK")
</pallas_src>

<mosaic_0001>
module attributes {stable_mosaic.version = 11 : i64} {
  func.func @tcn_fused_kernel(%arg0: i32, %arg1: memref<1x4x16xf32, #tpu.memory_space<vmem>>, %arg2: memref<8x12xf32, #tpu.memory_space<vmem>>, %arg3: memref<8x1xf32, #tpu.memory_space<vmem>>, %arg4: memref<8x24xf32, #tpu.memory_space<vmem>>, %arg5: memref<8x1xf32, #tpu.memory_space<vmem>>, %arg6: memref<8x4xf32, #tpu.memory_space<vmem>>, %arg7: memref<8x1xf32, #tpu.memory_space<vmem>>, %arg8: memref<16x24xf32, #tpu.memory_space<vmem>>, %arg9: memref<16x1xf32, #tpu.memory_space<vmem>>, %arg10: memref<16x48xf32, #tpu.memory_space<vmem>>, %arg11: memref<16x1xf32, #tpu.memory_space<vmem>>, %arg12: memref<16x8xf32, #tpu.memory_space<vmem>>, %arg13: memref<16x1xf32, #tpu.memory_space<vmem>>, %arg14: memref<1x16x16xf32, #tpu.memory_space<vmem>>) attributes {dimension_semantics = [#tpu.dimension_semantics<parallel>], iteration_bounds = array<i64: 2>, scalar_prefetch = 0 : i64, scratch_operands = 0 : i64, tpu.core_type = #tpu.core_type<tc>, window_params = [{transform_indices = @transform_0, window_bounds = array<i64: 1, 4, 16>}, {pipeline_mode = #tpu.pipeline_mode<synchronous>, transform_indices = @transform_1, window_bounds = array<i64: 8, 12>}, {pipeline_mode = #tpu.pipeline_mode<synchronous>, transform_indices = @transform_2, window_bounds = array<i64: 8, 1>}, {pipeline_mode = #tpu.pipeline_mode<synchronous>, transform_indices = @transform_3, window_bounds = array<i64: 8, 24>}, {pipeline_mode = #tpu.pipeline_mode<synchronous>, transform_indices = @transform_4, window_bounds = array<i64: 8, 1>}, {pipeline_mode = #tpu.pipeline_mode<synchronous>, transform_indices = @transform_5, window_bounds = array<i64: 8, 4>}, {pipeline_mode = #tpu.pipeline_mode<synchronous>, transform_indices = @transform_6, window_bounds = array<i64: 8, 1>}, {pipeline_mode = #tpu.pipeline_mode<synchronous>, transform_indices = @transform_7, window_bounds = array<i64: 16, 24>}, {pipeline_mode = #tpu.pipeline_mode<synchronous>, transform_indices = @transform_8, window_bounds = array<i64: 16, 1>}, {pipeline_mode = #tpu.pipeline_mode<synchronous>, transform_indices = @transform_9, window_bounds = array<i64: 16, 48>}, {pipeline_mode = #tpu.pipeline_mode<synchronous>, transform_indices = @transform_10, window_bounds = array<i64: 16, 1>}, {pipeline_mode = #tpu.pipeline_mode<synchronous>, transform_indices = @transform_11, window_bounds = array<i64: 16, 8>}, {pipeline_mode = #tpu.pipeline_mode<synchronous>, transform_indices = @transform_12, window_bounds = array<i64: 16, 1>}, {transform_indices = @transform_13, window_bounds = array<i64: 1, 16, 16>}]} {
    %c0 = arith.constant 0 : index
    %c0_0 = arith.constant 0 : index
    %c0_1 = arith.constant 0 : index
    %0 = vector.load %arg1[%c0, %c0_0, %c0_1] : memref<1x4x16xf32, #tpu.memory_space<vmem>>, vector<1x4x16xf32>
    %1 = vector.shape_cast %0 : vector<1x4x16xf32> to vector<4x16xf32>
    %c0_2 = arith.constant 0 : index
    %c0_3 = arith.constant 0 : index
    %2 = vector.load %arg2[%c0_2, %c0_3] : memref<8x12xf32, #tpu.memory_space<vmem>>, vector<8x12xf32>
    %c0_4 = arith.constant 0 : index
    %c0_5 = arith.constant 0 : index
    %3 = vector.load %arg3[%c0_4, %c0_5] : memref<8x1xf32, #tpu.memory_space<vmem>>, vector<8x1xf32>
    %c0_6 = arith.constant 0 : index
    %c0_7 = arith.constant 0 : index
    %4 = vector.load %arg4[%c0_6, %c0_7] : memref<8x24xf32, #tpu.memory_space<vmem>>, vector<8x24xf32>
    %c0_8 = arith.constant 0 : index
    %c0_9 = arith.constant 0 : index
    %5 = vector.load %arg5[%c0_8, %c0_9] : memref<8x1xf32, #tpu.memory_space<vmem>>, vector<8x1xf32>
    %c0_10 = arith.constant 0 : index
    %c0_11 = arith.constant 0 : index
    %6 = vector.load %arg6[%c0_10, %c0_11] : memref<8x4xf32, #tpu.memory_space<vmem>>, vector<8x4xf32>
    %c0_12 = arith.constant 0 : index
    %c0_13 = arith.constant 0 : index
    %7 = vector.load %arg7[%c0_12, %c0_13] : memref<8x1xf32, #tpu.memory_space<vmem>>, vector<8x1xf32>
    %cst = arith.constant 0.000000e+00 : f32
    %8 = vector.broadcast %cst : f32 to vector<4x2xf32>
    %9 = tpu.concatenate %8, %1 in 1 : vector<4x2xf32>, vector<4x16xf32> -> vector<4x18xf32>
    %10 = vector.extract_strided_slice %9 {offsets = [0, 0], sizes = [4, 16], strides = [1, 1]} : vector<4x18xf32> to vector<4x16xf32>
    %11 = vector.extract_strided_slice %9 {offsets = [0, 1], sizes = [4, 16], strides = [1, 1]} : vector<4x18xf32> to vector<4x16xf32>
    %12 = vector.extract_strided_slice %9 {offsets = [0, 2], sizes = [4, 16], strides = [1, 1]} : vector<4x18xf32> to vector<4x16xf32>
    %13 = tpu.concatenate %10, %11, %12 in 0 : vector<4x16xf32>, vector<4x16xf32>, vector<4x16xf32> -> vector<12x16xf32>
    %cst_14 = arith.constant dense<0.000000e+00> : vector<8x16xf32>
    %14 = tpu.matmul %2, %13, %cst_14 {dimension_numbers = #tpu.dot_dimension_numbers<[1], [0], [0], [1], [0, 0, 1, 1], [], []>} : vector<8x12xf32>, vector<12x16xf32>, vector<8x16xf32> -> vector<8x16xf32>
    %15 = vector.broadcast %3 : vector<8x1xf32> to vector<8x16xf32>
    %16 = arith.addf %14, %15 : vector<8x16xf32>
    %cst_15 = arith.constant 0.000000e+00 : f32
    %17 = vector.broadcast %cst_15 : f32 to vector<8x16xf32>
    %18 = arith.maximumf %16, %17 : vector<8x16xf32>
    %cst_16 = arith.constant 0.000000e+00 : f32
    %19 = vector.broadcast %cst_16 : f32 to vector<8x2xf32>
    %20 = tpu.concatenate %19, %18 in 1 : vector<8x2xf32>, vector<8x16xf32> -> vector<8x18xf32>
    %21 = vector.extract_strided_slice %20 {offsets = [0, 0], sizes = [8, 16], strides = [1, 1]} : vector<8x18xf32> to vector<8x16xf32>
    %22 = vector.extract_strided_slice %20 {offsets = [0, 1], sizes = [8, 16], strides = [1, 1]} : vector<8x18xf32> to vector<8x16xf32>
    %23 = vector.extract_strided_slice %20 {offsets = [0, 2], sizes = [8, 16], strides = [1, 1]} : vector<8x18xf32> to vector<8x16xf32>
    %24 = tpu.concatenate %21, %22, %23 in 0 : vector<8x16xf32>, vector<8x16xf32>, vector<8x16xf32> -> vector<24x16xf32>
    %cst_17 = arith.constant dense<0.000000e+00> : vector<8x16xf32>
    %25 = tpu.matmul %4, %24, %cst_17 {dimension_numbers = #tpu.dot_dimension_numbers<[1], [0], [0], [1], [0, 0, 1, 1], [], []>} : vector<8x24xf32>, vector<24x16xf32>, vector<8x16xf32> -> vector<8x16xf32>
    %26 = vector.broadcast %5 : vector<8x1xf32> to vector<8x16xf32>
    %27 = arith.addf %25, %26 : vector<8x16xf32>
    %cst_18 = arith.constant 0.000000e+00 : f32
    %28 = vector.broadcast %cst_18 : f32 to vector<8x16xf32>
    %29 = arith.maximumf %27, %28 : vector<8x16xf32>
    %cst_19 = arith.constant dense<0.000000e+00> : vector<8x16xf32>
    %30 = tpu.matmul %6, %1, %cst_19 {dimension_numbers = #tpu.dot_dimension_numbers<[1], [0], [0], [1], [0, 0, 1, 1], [], []>} : vector<8x4xf32>, vector<4x16xf32>, vector<8x16xf32> -> vector<8x16xf32>
    %31 = vector.broadcast %7 : vector<8x1xf32> to vector<8x16xf32>
    %32 = arith.addf %30, %31 : vector<8x16xf32>
    %33 = arith.addf %29, %32 : vector<8x16xf32>
    %cst_20 = arith.constant 0.000000e+00 : f32
    %34 = vector.broadcast %cst_20 : f32 to vector<8x16xf32>
    %35 = arith.maximumf %33, %34 : vector<8x16xf32>
    %c0_21 = arith.constant 0 : index
    %c0_22 = arith.constant 0 : index
    %36 = vector.load %arg8[%c0_21, %c0_22] : memref<16x24xf32, #tpu.memory_space<vmem>>, vector<16x24xf32>
    %c0_23 = arith.constant 0 : index
    %c0_24 = arith.constant 0 : index
    %37 = vector.load %arg9[%c0_23, %c0_24] : memref<16x1xf32, #tpu.memory_space<vmem>>, vector<16x1xf32>
    %c0_25 = arith.constant 0 : index
    %c0_26 = arith.constant 0 : index
    %38 = vector.load %arg10[%c0_25, %c0_26] : memref<16x48xf32, #tpu.memory_space<vmem>>, vector<16x48xf32>
    %c0_27 = arith.constant 0 : index
    %c0_28 = arith.constant 0 : index
    %39 = vector.load %arg11[%c0_27, %c0_28] : memref<16x1xf32, #tpu.memory_space<vmem>>, vector<16x1xf32>
    %c0_29 = arith.constant 0 : index
    %c0_30 = arith.constant 0 : index
    %40 = vector.load %arg12[%c0_29, %c0_30] : memref<16x8xf32, #tpu.memory_space<vmem>>, vector<16x8xf32>
    %c0_31 = arith.constant 0 : index
    %c0_32 = arith.constant 0 : index
    %41 = vector.load %arg13[%c0_31, %c0_32] : memref<16x1xf32, #tpu.memory_space<vmem>>, vector<16x1xf32>
    %cst_33 = arith.constant 0.000000e+00 : f32
    %42 = vector.broadcast %cst_33 : f32 to vector<8x4xf32>
    %43 = tpu.concatenate %42, %35 in 1 : vector<8x4xf32>, vector<8x16xf32> -> vector<8x20xf32>
    %44 = vector.extract_strided_slice %43 {offsets = [0, 0], sizes = [8, 16], strides = [1, 1]} : vector<8x20xf32> to vector<8x16xf32>
    %45 = vector.extract_strided_slice %43 {offsets = [0, 2], sizes = [8, 16], strides = [1, 1]} : vector<8x20xf32> to vector<8x16xf32>
    %46 = vector.extract_strided_slice %43 {offsets = [0, 4], sizes = [8, 16], strides = [1, 1]} : vector<8x20xf32> to vector<8x16xf32>
    %47 = tpu.concatenate %44, %45, %46 in 0 : vector<8x16xf32>, vector<8x16xf32>, vector<8x16xf32> -> vector<24x16xf32>
    %cst_34 = arith.constant dense<0.000000e+00> : vector<16x16xf32>
    %48 = tpu.matmul %36, %47, %cst_34 {dimension_numbers = #tpu.dot_dimension_numbers<[1], [0], [0], [1], [0, 0, 1, 1], [], []>} : vector<16x24xf32>, vector<24x16xf32>, vector<16x16xf32> -> vector<16x16xf32>
    %49 = vector.broadcast %37 : vector<16x1xf32> to vector<16x16xf32>
    %50 = arith.addf %48, %49 : vector<16x16xf32>
    %cst_35 = arith.constant 0.000000e+00 : f32
    %51 = vector.broadcast %cst_35 : f32 to vector<16x16xf32>
    %52 = arith.maximumf %50, %51 : vector<16x16xf32>
    %cst_36 = arith.constant 0.000000e+00 : f32
    %53 = vector.broadcast %cst_36 : f32 to vector<16x4xf32>
    %54 = tpu.concatenate %53, %52 in 1 : vector<16x4xf32>, vector<16x16xf32> -> vector<16x20xf32>
    %55 = vector.extract_strided_slice %54 {offsets = [0, 0], sizes = [16, 16], strides = [1, 1]} : vector<16x20xf32> to vector<16x16xf32>
    %56 = vector.extract_strided_slice %54 {offsets = [0, 2], sizes = [16, 16], strides = [1, 1]} : vector<16x20xf32> to vector<16x16xf32>
    %57 = vector.extract_strided_slice %54 {offsets = [0, 4], sizes = [16, 16], strides = [1, 1]} : vector<16x20xf32> to vector<16x16xf32>
    %58 = tpu.concatenate %55, %56, %57 in 0 : vector<16x16xf32>, vector<16x16xf32>, vector<16x16xf32> -> vector<48x16xf32>
    %cst_37 = arith.constant dense<0.000000e+00> : vector<16x16xf32>
    %59 = tpu.matmul %38, %58, %cst_37 {dimension_numbers = #tpu.dot_dimension_numbers<[1], [0], [0], [1], [0, 0, 1, 1], [], []>} : vector<16x48xf32>, vector<48x16xf32>, vector<16x16xf32> -> vector<16x16xf32>
    %60 = vector.broadcast %39 : vector<16x1xf32> to vector<16x16xf32>
    %61 = arith.addf %59, %60 : vector<16x16xf32>
    %cst_38 = arith.constant 0.000000e+00 : f32
    %62 = vector.broadcast %cst_38 : f32 to vector<16x16xf32>
    %63 = arith.maximumf %61, %62 : vector<16x16xf32>
    %cst_39 = arith.constant dense<0.000000e+00> : vector<16x16xf32>
    %64 = tpu.matmul %40, %35, %cst_39 {dimension_numbers = #tpu.dot_dimension_numbers<[1], [0], [0], [1], [0, 0, 1, 1], [], []>} : vector<16x8xf32>, vector<8x16xf32>, vector<16x16xf32> -> vector<16x16xf32>
    %65 = vector.broadcast %41 : vector<16x1xf32> to vector<16x16xf32>
    %66 = arith.addf %64, %65 : vector<16x16xf32>
    %67 = arith.addf %63, %66 : vector<16x16xf32>
    %cst_40 = arith.constant 0.000000e+00 : f32
    %68 = vector.broadcast %cst_40 : f32 to vector<16x16xf32>
    %69 = arith.maximumf %67, %68 : vector<16x16xf32>
    %c0_41 = arith.constant 0 : index
    %c0_42 = arith.constant 0 : index
    %c0_43 = arith.constant 0 : index
    %70 = vector.load %arg14[%c0_41, %c0_42, %c0_43] : memref<1x16x16xf32, #tpu.memory_space<vmem>>, vector<1x16x16xf32>
    %71 = vector.shape_cast %70 : vector<1x16x16xf32> to vector<16x16xf32>
    %72 = vector.shape_cast %69 : vector<16x16xf32> to vector<1x16x16xf32>
    tpu.vector_store %arg14[%c0_41, %c0_42, %c0_43], %72 {strides = array<i32>} : memref<1x16x16xf32, #tpu.memory_space<vmem>>, vector<1x16x16xf32>,
    return
  }
  func.func @transform_0(%arg0: i32) -> (i32, i32, i32) {
    %c0_i32 = arith.constant 0 : i32
    %c0_i32_0 = arith.constant 0 : i32
    %c0_i32_1 = arith.constant 0 : i32
    return %arg0, %c0_i32, %c0_i32_0 : i32, i32, i32
  }
  func.func @transform_1(%arg0: i32) -> (i32, i32) {
    %c0_i32 = arith.constant 0 : i32
    %c0_i32_0 = arith.constant 0 : i32
    %c0_i32_1 = arith.constant 0 : i32
    return %c0_i32, %c0_i32_0 : i32, i32
  }
  func.func @transform_2(%arg0: i32) -> (i32, i32) {
    %c0_i32 = arith.constant 0 : i32
    %c0_i32_0 = arith.constant 0 : i32
    %c0_i32_1 = arith.constant 0 : i32
    return %c0_i32, %c0_i32_0 : i32, i32
  }
  func.func @transform_3(%arg0: i32) -> (i32, i32) {
    %c0_i32 = arith.constant 0 : i32
    %c0_i32_0 = arith.constant 0 : i32
    %c0_i32_1 = arith.constant 0 : i32
    return %c0_i32, %c0_i32_0 : i32, i32
  }
  func.func @transform_4(%arg0: i32) -> (i32, i32) {
    %c0_i32 = arith.constant 0 : i32
    %c0_i32_0 = arith.constant 0 : i32
    %c0_i32_1 = arith.constant 0 : i32
    return %c0_i32, %c0_i32_0 : i32, i32
  }
  func.func @transform_5(%arg0: i32) -> (i32, i32) {
    %c0_i32 = arith.constant 0 : i32
    %c0_i32_0 = arith.constant 0 : i32
    %c0_i32_1 = arith.constant 0 : i32
    return %c0_i32, %c0_i32_0 : i32, i32
  }
  func.func @transform_6(%arg0: i32) -> (i32, i32) {
    %c0_i32 = arith.constant 0 : i32
    %c0_i32_0 = arith.constant 0 : i32
    %c0_i32_1 = arith.constant 0 : i32
    return %c0_i32, %c0_i32_0 : i32, i32
  }
  func.func @transform_7(%arg0: i32) -> (i32, i32) {
    %c0_i32 = arith.constant 0 : i32
    %c0_i32_0 = arith.constant 0 : i32
    %c0_i32_1 = arith.constant 0 : i32
    return %c0_i32, %c0_i32_0 : i32, i32
  }
  func.func @transform_8(%arg0: i32) -> (i32, i32) {
    %c0_i32 = arith.constant 0 : i32
    %c0_i32_0 = arith.constant 0 : i32
    %c0_i32_1 = arith.constant 0 : i32
    return %c0_i32, %c0_i32_0 : i32, i32
  }
  func.func @transform_9(%arg0: i32) -> (i32, i32) {
    %c0_i32 = arith.constant 0 : i32
    %c0_i32_0 = arith.constant 0 : i32
    %c0_i32_1 = arith.constant 0 : i32
    return %c0_i32, %c0_i32_0 : i32, i32
  }
  func.func @transform_10(%arg0: i32) -> (i32, i32) {
    %c0_i32 = arith.constant 0 : i32
    %c0_i32_0 = arith.constant 0 : i32
    %c0_i32_1 = arith.constant 0 : i32
    return %c0_i32, %c0_i32_0 : i32, i32
  }
  func.func @transform_11(%arg0: i32) -> (i32, i32) {
    %c0_i32 = arith.constant 0 : i32
    %c0_i32_0 = arith.constant 0 : i32
    %c0_i32_1 = arith.constant 0 : i32
    return %c0_i32, %c0_i32_0 : i32, i32
  }
  func.func @transform_12(%arg0: i32) -> (i32, i32) {
    %c0_i32 = arith.constant 0 : i32
    %c0_i32_0 = arith.constant 0 : i32
    %c0_i32_1 = arith.constant 0 : i32
    return %c0_i32, %c0_i32_0 : i32, i32
  }
  func.func @transform_13(%arg0: i32) -> (i32, i32, i32) {
    %c0_i32 = arith.constant 0 : i32
    %c0_i32_0 = arith.constant 0 : i32
    %c0_i32_1 = arith.constant 0 : i32
    return %arg0, %c0_i32, %c0_i32_0 : i32, i32, i32
  }
}

</mosaic_0001>

<bundles_post_ra>
// kernel: tpu_custom_call.1
= control target key start
LH: loop header
LB: loop body
LE: loop exit
PB: predicated region body
PF: predicated region fallthrough
CT: control target
= control target key end

     0   :  { %s1235_s0 = inlined_call_operand.vmem [shape: f32[2,4,16], index: 0, kind: input, shape index: {}]   ;;  %s1236_s1 = inlined_call_operand.vmem [shape: f32[8,12], index: 1, kind: input, shape index: {}]   ;;  %s1237_s2 = inlined_call_operand.vmem [shape: f32[8,1], index: 2, kind: input, shape index: {}]   ;;  %s1238_s3 = inlined_call_operand.vmem [shape: f32[8,24], index: 3, kind: input, shape index: {}]   ;;  %s1239_s4 = inlined_call_operand.vmem [shape: f32[8,1], index: 4, kind: input, shape index: {}]   ;;  %s1240_s5 = inlined_call_operand.vmem [shape: f32[8,4], index: 5, kind: input, shape index: {}]   ;;  %s1241_s6 = inlined_call_operand.vmem [shape: f32[8,1], index: 6, kind: input, shape index: {}]   ;;  %s1242_s7 = inlined_call_operand.vmem [shape: f32[16,24], index: 7, kind: input, shape index: {}]   ;;  %s1243_s8 = inlined_call_operand.vmem [shape: f32[16,1], index: 8, kind: input, shape index: {}]   ;;  %s1244_s9 = inlined_call_operand.vmem [shape: f32[16,48], index: 9, kind: input, shape index: {}]   ;;  %s1245_s10 = inlined_call_operand.vmem [shape: f32[16,1], index: 10, kind: input, shape index: {}]   ;;  %s1246_s11 = inlined_call_operand.vmem [shape: f32[16,8], index: 11, kind: input, shape index: {}]   ;;  %s1247_s12 = inlined_call_operand.vmem [shape: f32[16,1], index: 12, kind: input, shape index: {}]   ;;  %s1248_s13 = inlined_call_operand.hbm [shape: f32[2,16,16], index: 13, kind: output, shape index: {}]  }
   0x1   :  { %1250 = sst [smem:[#allocation6_spill]] %s1235_s0 }
   0x2   :  { %1251 = sst [smem:[#allocation7_spill]] %s1236_s1 }
   0x3   :  { %1252 = sst [smem:[#allocation8_spill]] %s1237_s2 }
   0x4   :  { %18 = vsyncpa [#allocation3], 0 }
   0x5   :  { %20 = vsyncpa [#allocation3 + $0x1], 0  ;;  %s1060_s25 = smov 0   ;;  %s1062_s26 = smov 0  }
   0x6   :  { %s1064_s27 = smov 0   ;;  %s1066_s28 = smov 0  }
   0x7 LB: > { %s1081_s29 = sadd.s32 4294967295, %s980_s28   ;;  %s821_s30 = sadd.s32 4294967294, %s980_s28   ;;  %s980_s28 = sphi %s1066_s28, %s1266_s28   ;;  %s976_s27 = sphi %s1064_s27, %s1265_s27   ;;  %s972_s26 = sphi %s1062_s26, %s1264_s26   ;;  %s968_s25 = sphi %s1060_s25, %s1263_s25  }
   0x8   : > { %s1085_s14 = sadd.s32 1, %s980_s28   ;;  %s311_s15 = sadd.s32 1, %s976_s27 }
   0x9   : > { %s308_s16 = ssub.s32 %s980_s28, %s1085_s14  ;;  %p321_p0 = scmp.ne.s32.totalorder %s976_s27, %s972_s26 }
   0xa   : > { %p309_p1 = scmp.eq.s32.totalorder %s308_s16, 0  ;;  %p322_p2 = scmp.eq.s32.totalorder %s1081_s29, 1 }
   0xb   : > { %p327_p3 = scmp.ne.s32.totalorder %s972_s26, %s968_s25  ;;  %p328_p4 = scmp.eq.s32.totalorder %s821_s30, 1 }
   0xc   : > { %s1096_s17 = scalar_select %p309_p1, %s976_s27, %s311_s15  }
   0xd   : > { %p1098_p5 = por %p322_p2, %p321_p0  ;;  %p1102_p6 = por %p328_p4, %p327_p3 }
   0xe   : > { %1253 = sst [smem:[#allocation5_spill]] %s1096_s17  ;;  %p824_p7 = scmp.ge.s32.totalorder %s980_s28, 1 }
   0xf   : > { %p389_p8 = scmp.lt.s32.totalorder %s980_s28, 3 }
  0x11   : > { %p390_p9 = pnand %p824_p7, %p389_p8 }
  0x12   : > { %p432_p10 = scmp.lt.s32.totalorder (!%p390_p9), %s1081_s29, 1  ;;  %s1256_s0 = sld [smem:[#allocation6_spill]] (!%p390_p9) }
  0x13   : > { %393 = sbr.rel (%p390_p9) target bundleno = 1496 (0x5d8), region = 72  ;;  %s982_s30 = smov (!%p390_p9), 2  }
  0x14   : > { %s983_s15 = smov (!%p390_p9), 126   ;;  %s984_s16 = smov (!%p390_p9), 127  }
  0x15   : > { %s1257_s2 = sld [smem:[#allocation8_spill]] (!%p390_p9)  ;;  %s986_s23 = smov (!%p390_p9), 4  }
  0x16   : > { %s1258_s1 = sld [smem:[#allocation7_spill]] (!%p390_p9) }
  0x18   : > { %s433_s20 = scalar_select %p432_p10, %s1081_s29, 1  ;;  %vm447_vm0 = vcmask 15360   ;;  %vm456_vm1 = vcmask 1043456   ;;  %v985_v5 = vmov 0   ;;  %v440_v6 = vld [vmem:[%s1239_s4] sm:$0xff]  ;;  %vm463_vm2 = vcmask 97280  }
  0x19   : > { %905 = vset.pattern.permute.xlu1 %v985_v5  ;;  %906 = vset.pattern.permute.xlu2 %v985_v5  ;;  %v441_v17 = vld [vmem:[%s1240_s5] sm:$0xff]  ;;  %vm537_vm3 = vcmask 31744   ;;  %vm829_vm4 = vmneg %vm447_vm0  ;;  %vm507_vm5 = vcmask 195584   ;;  %v568_v34 = vld [vmem:[%s1243_s8 + $0x8] sm:$0xff]  ;;  %vm706_vm7 = vcmask 64512   ;;  %vm664_vm8 = vcmask 392192  }
  0x1a   : > { %s826_s21 = sshll.u32 %s433_s20, 2  ;;  %907 = vset.pattern.permute.xlu0 %v985_v5  ;;  %v442_v18 = vld [vmem:[%s1241_s6] sm:$0xff]  ;;  %vm1151_vm6 = vmneg %vm537_vm3  ;;  %v566_v39 = vld [vmem:[%s1242_s7 + $0x8] sm:$0xff]  ;;  %vm740_vm9 = vcmask 130048  }
  0x1b   : > { %s435_s24 = scalar_lea.vmem %s1256_s0, %s826_s21  ;;  %v438_v4 = vld [vmem:[%s1257_s2] sm:$0xff]  ;;  %v574_v41 = vld [vmem:[%s1246_s11 + $0x8] sm:$0xff]  ;;  %s1261_s21 = smov 124  }
  0x1c   : > { %v436_v0 = vld [vmem:[%s435_s24] sm:$0xf]  ;;  %s1249_s24 = smov 124   ;;  %v576_v51 = vld [vmem:[%s1247_s12 + $0x8] sm:$0xff] }
  0x1d   : > { %444 = vrot.lane.b32.xlu0 %v436_v0, %s982_s30  ;;  %832 = vmatpush.msk.msra.mxu2 %vm456_vm1, %v436_v0  ;;  %v437_v9 = vld [vmem:[%s1258_s1] sm:$0xff]  ;;  %v572_v58 = vld [vmem:[%s1245_s10 + $0x8] sm:$0xff] }
  0x1e   : > { %833 = vmatmul.msk.f32.vlgmr.msra.gmra.mxu2 %vm537_vm3, %v441_v17  ;;  %v439_v21 = vld [vmem:[%s1238_s3] sm:$0xff] }
  0x1f   : > { %v567_v33 = vld [vmem:[%s1243_s8] sm:$0xff] }
  0x20   : > { %v565_v38 = vld [vmem:[%s1242_s7] sm:$0xff] }
  0x21   : > { %v573_v40 = vld [vmem:[%s1246_s11] sm:$0xff] }
  0x22   : > { %v571_v49 = vld [vmem:[%s1245_s10] sm:$0xff] }
  0x23   : > { %v575_v57 = vld [vmem:[%s1247_s12] sm:$0xff] }
  0x8f   : > { %v445_v1 = vpop.permute.xlu0 %444 }
  0x90   : > { %v448_v2 = vsel %vm447_vm0, 0.0, %v445_v1  ;;  %v569_v1 = vld [vmem:[%s1244_s9] sm:$0xff] }
  0x91   : > { %454 = vrot.lane.b32.xlu0 %v448_v2, %s983_s15  ;;  %v450_v3 = vrot.slane %v448_v2, 4 }
  0x93   : > { %451 = vrot.lane.b32.xlu1 %v450_v3, %s984_s16 }
  0x9b   : > { %460 = vperm.xlu1 %905, %v438_v4  }
  0xa1   : > { %v560_v23 = vpop.f32.mrf.mxu2 }
  0xa3   : > { %504 = vperm.xlu1 %905, %v440_v6  }
 0x103   : > { %v455_v7 = vpop.permute.xlu0 %454 }
 0x104   : > { %827 = vmatpush.msk.msra.mxu0 %vm456_vm1, %v455_v7 }
 0x105   : > { %v452_v8 = vpop.permute.xlu1 %451 }
 0x106   : > { %v457_v10 = vsel %vm456_vm1, %v448_v2, %v452_v8  ;;  %v570_v2 = vld [vmem:[%s1244_s9 + $0x8] sm:$0xff] }
 0x107   : > { %484 = vmatpush.msra.mxu0 %v457_v10 }
 0x108   : > { %828 = vmatmul.msk.f32.vlgmr.msra.gmra.mxu0 %vm463_vm2, %v437_v9 }
 0x10d   : > { %v461_v11 = vpop.permute.xlu1 %460 }
 0x115   : > { %v505_v24 = vpop.permute.xlu1 %504 }
 0x185   : > { %v486_v12 = vpop.f32.mrf.mxu0 }
 0x186   : > { %v487_v13 = vadd.f32 %v486_v12, %v461_v11 }
 0x188   : > { %v489_v14 = vmax.f32 %v487_v13, 0.0 }
 0x18a   : > { %491 = vrot.lane.b32.xlu2 %v489_v14, %s982_s30  ;;  %s851_s30 = sshll.u32 %s1081_s29, 4 }
 0x1e4   : > { %v492_v15 = vpop.permute.xlu2 %491 }
 0x1e5   : > { %v494_v16 = vsel %vm447_vm0, 0.0, %v492_v15 }
 0x1e6   : > { %496 = vrot.lane.b32.xlu0 %v494_v16, %s984_s16  ;;  %499 = vrot.lane.b32.xlu2 %v494_v16, %s983_s15 }
 0x1ee   : > { %534 = vperm.xlu2 %906, %v442_v18  }
 0x240   : > { %v500_v19 = vpop.permute.xlu2 %499 }
 0x241   : > { %524 = vmatpush.msra.mxu1 %v500_v19 }
 0x248   : > { %v535_v22 = vpop.permute.xlu2 %534 }
 0x249   : > { %v561_v27 = vadd.f32 %v560_v23, %v535_v22 }
 0x258   : > { %v497_v20 = vpop.permute.xlu0 %496 }
 0x259   : > { %525 = vmatpush.msra.mxu1 %v497_v20 }
 0x25b   : > { %830 = vmatpush.msk.msra.mxu1 %vm829_vm4, %v492_v15 }
 0x25c   : > { %831 = vmatmul.msk.f32.vlgmr.msra.gmra.mxu1 %vm507_vm5, %v439_v21 }
 0x2d9   : > { %v528_v25 = vpop.f32.mrf.mxu1 }
 0x2da   : > { %v529_v26 = vadd.f32 %v528_v25, %v505_v24 }
 0x2dc   : > { %v531_v28 = vmax.f32 %v529_v26, 0.0 }
 0x2de   : > { %v563_v29 = vadd.f32 %v561_v27, %v531_v28 }
 0x2e0   : > { %v564_v30 = vmax.f32 %v563_v29, 0.0 }
 0x2e2   : > { %578 = vrot.lane.b32.xlu0 %v564_v30, %s986_s23  ;;  %728 = vmatpush.msrb.mxu0 %v564_v30 }
 0x2e3   : > { %844 = vmatmul.msk.f32.vlgmr.msrb.gmra.mxu0 %vm706_vm7, %v573_v40 }
 0x2ea   : > { %596 = vperm.xlu0 %907, %v568_v34  }
 0x2eb   : > { %845 = vmatmul.msk.f32.gmra.mxu0 %vm706_vm7, %v574_v41 }
 0x354   : > { %v579_v31 = vpop.permute.xlu0 %578 }
 0x355   : > { %v581_v32 = vsel %vm537_vm3, 0.0, %v579_v31 }
 0x356   : > { %583 = vrot.lane.b32.xlu2 %v581_v32, %s983_s15  ;;  %586 = vrot.lane.b32.xlu1 %v581_v32, %s1249_s24 }
 0x35c   : > { %v597_v46 = vpop.permute.xlu0 %596 }
 0x35e   : > { %591 = vperm.xlu1 %905, %v567_v33  }
 0x360   : > { %v730_v4 = vpop.f32.mrf.mxu0 }
 0x368   : > { %v733_v11 = vpop.f32.mrf.mxu0 }
 0x3b0   : > { %v584_v36 = vpop.permute.xlu2 %583 }
 0x3c8   : > { %v587_v35 = vpop.permute.xlu1 %586 }
 0x3c9   : > { %618 = vmatpush.msra.mxu3 %v587_v35 }
 0x3cb   : > { %619 = vmatpush.msra.mxu3 %v584_v36 }
 0x3cd   : > { %835 = vmatpush.msk.msra.mxu3 %vm1151_vm6, %v579_v31 }
 0x3ce   : > { %836 = vmatmul.msk.f32.vlgmr.msra.gmra.mxu3 %vm507_vm5, %v565_v38 }
 0x3d0   : > { %v592_v42 = vpop.permute.xlu1 %591 }
 0x3d6   : > { %837 = vmatmul.msk.f32.gmra.mxu3 %vm507_vm5, %v566_v39 }
 0x451   : > { %v622_v43 = vpop.f32.mrf.mxu3 }
 0x452   : > { %v623_v44 = vadd.f32 %v622_v43, %v592_v42 }
 0x454   : > { %v628_v45 = vmax.f32 %v623_v44, 0.0 }
 0x456   : > { %632 = vrot.lane.b32.xlu1 %v628_v45, %s986_s23 }
 0x459   : > { %v625_v47 = vpop.f32.mrf.mxu3 }
 0x45a   : > { %v626_v48 = vadd.f32 %v625_v47, %v597_v46 }
 0x45c   : > { %v629_v50 = vmax.f32 %v626_v48, 0.0 }
 0x45e   : > { %656 = vperm.xlu1 %905, %v571_v49   ;;  %634 = vrot.lane.b32.xlu2 %v629_v50, %s986_s23 }
 0x466   : > { %703 = vperm.xlu1 %905, %v576_v51  }
 0x4b8   : > { %v635_v52 = vpop.permute.xlu2 %634 }
 0x4b9   : > { %v639_v53 = vsel %vm537_vm3, 0.0, %v635_v52 }
 0x4c8   : > { %v633_v54 = vpop.permute.xlu1 %632 }
 0x4c9   : > { %v638_v55 = vsel %vm537_vm3, 0.0, %v633_v54 }
 0x4ca   : > { %v913_v56 = vpack.i.bf16 %v638_v55, %v639_v53 }
 0x4cc   : > { %914 = vrot.lane.b32.xlu0 %v913_v56, %s983_s15  ;;  %909 = vrot.lane.b32.xlu2 %v913_v56, %s1261_s21  ;;  %s429_s21 = sand.u32 1, %s972_s26   ;;  %s755_s15 = scalar_lea.hbm %s1248_s13, %s851_s30 }
 0x4cd   : > { %s825_s22 = sshll.u32 %s429_s21, 4  ;;  %s758_s20 = sshll.u32 %s755_s15, 4  ;;  %s759_s20 = int_to_ptr.hbm [resolvable:$true] %s758_s20 }
 0x4ce   : > { %s431_s17 = scalar_lea.vmem [#allocation2], %s825_s22  ;;  %s744_s29 = scalar_lea.sflag [#allocation3], %s429_s21 }
 0x4cf   : > { %s756_s24 = sshll.u32 %s431_s17, 4  ;;  %s932_s0 = sshra.s32 %s759_s20, 4  ;;  %s757_s24 = int_to_ptr.vmem [resolvable:$true] %s756_s24  ;;  %s933_s0 = int_to_ptr.hbm [resolvable:$true] %s932_s0 }
 0x4d0   : > { %v657_v3 = vpop.permute.xlu1 %656  ;;  %s934_s1 = scalar_lea.hbm %s933_s0, 16  ;;  %s938_s22 = scalar_lea.hbm %s1248_s13, 32 }
 0x4d1   : > { %p935_p11 = scmp.ne.s32.totalorder %s933_s0, %s934_s1  ;;  %p939_p0 = scmp.lt.s32.totalorder %s933_s0, %s1248_s13 }
 0x4d2   : > { %p940_p1 = scmp.lt.s32.totalorder %s938_s22, %s934_s1 }
 0x4d3   : > { %p936_p12 = pnand %p935_p11, %p1098_p5 }
 0x4d4   : > { %698 = vperm.xlu0 %907, %v575_v57   ;;  %661 = vperm.xlu2 %906, %v572_v58   ;;  %p941_p2 = por %p940_p1, %p939_p0 }
 0x4d5   : > { %p937_p13 = pneg %p936_p12 }
 0x4d7   : > { %p942_p3 = pnand %p941_p2, %p937_p13 }
 0x4d8   : > { %v704_v10 = vpop.permute.xlu1 %703 }
 0x4d9   : > { %v734_v17 = vadd.f32 %v733_v11, %v704_v10 }
 0x526   : > { %v910_v59 = vpop.permute.xlu2 %909 }
 0x527   : > { %v911_v60 = vunpack.i.l.bf16 %v910_v59  ;;  %v912_v61 = vunpack.i.h.bf16 %v910_v59 }
 0x529   : > { %681 = vmatpush.msrb.mxu1 %v911_v60  ;;  %852 = vmatpush.msrb.mxu2 %v911_v60 }
 0x52b   : > { %682 = vmatpush.msrb.mxu1 %v912_v61  ;;  %853 = vmatpush.msrb.mxu2 %v912_v61 }
 0x52e   : > { %v662_v13 = vpop.permute.xlu2 %661 }
 0x53e   : > { %v915_v62 = vpop.permute.xlu0 %914 }
 0x53f   : > { %v916_v63 = vunpack.i.l.bf16 %v915_v62  ;;  %v917_v0 = vunpack.i.h.bf16 %v915_v62 }
 0x541   : > { %683 = vmatpush.msrb.mxu1 %v916_v63  ;;  %854 = vmatpush.msrb.mxu2 %v916_v63 }
 0x543   : > { %684 = vmatpush.msrb.mxu1 %v917_v0  ;;  %855 = vmatpush.msrb.mxu2 %v917_v0 }
 0x545   : > { %839 = vmatpush.msk.msrb.mxu1 %vm1151_vm6, %v635_v52  ;;  %856 = vmatpush.msk.msrb.mxu2 %vm1151_vm6, %v635_v52 }
 0x546   : > { %v699_v5 = vpop.permute.xlu0 %698 }
 0x547   : > { %841 = vmatpush.msk.msrb.mxu1 %vm1151_vm6, %v633_v54  ;;  %857 = vmatpush.msk.msrb.mxu2 %vm1151_vm6, %v633_v54  ;;  %v731_v8 = vadd.f32 %v730_v4, %v699_v5 }
 0x548   : > { %842 = vmatmul.msk.f32.vlgmr.msrb.gmra.mxu1 %vm664_vm8, %v569_v1  ;;  %843 = vmatmul.msk.f32.vlgmr.msrb.gmra.mxu2 %vm664_vm8, %v570_v2 }
 0x5c5   : > { %v688_v6 = vpop.f32.mrf.mxu1 }
 0x5c6   : > { %v689_v7 = vadd.f32 %v688_v6, %v657_v3 }
 0x5c8   : > { %v694_v9 = vmax.f32 %v689_v7, 0.0 }
 0x5ca   : > { %v736_v12 = vadd.f32 %v731_v8, %v694_v9 }
 0x5cb   : > { %v691_v14 = vpop.f32.mrf.mxu2 }
 0x5cc   : > { %v738_v15 = vmax.f32 %v736_v12, 0.0  ;;  %v692_v16 = vadd.f32 %v691_v14, %v662_v13 }
 0x5ce   : > { %741 = vst.msk [vmem:[%s431_s17] sm:$0xff] %vm740_vm9, %v738_v15  ;;  %v695_v18 = vmax.f32 %v692_v16, 0.0 }
 0x5d0   : > { %v737_v19 = vadd.f32 %v734_v17, %v695_v18 }
 0x5d2   : > { %v739_v20 = vmax.f32 %v737_v19, 0.0 }
 0x5d4   : > { %742 = vst.msk [vmem:[%s431_s17 + $0x8] sm:$0xff] %vm740_vm9, %v739_v20 }
 0x5d5   : > { %945 = shalt.err (!%p942_p3)
}
 0x5d6   : > { %s988_s21 = smov 128   ;;  %s989_s15 = smov 8  }
 0x5d7   : > { %858 = dma.vmem_to_hbm [thread:$0]  (%p1098_p5), %s757_s24, 256, %s759_s20, %s744_s29, %s988_s21, %s988_s21, %s989_s15  }
 0x5d8 PF: > { %p864_p4 = scmp.ge.s32.totalorder %s980_s28, 2  ;;  %s773_s17 = sand.u32 1, %s968_s25  }
 0x5d9   : > { %s774_s2 = scalar_lea.sflag [#allocation3], %s773_s17 }
 0x5da   : > { %p861_p7 = pnand %p864_p4, %p1102_p6 }
 0x5dc   : > { %p862_p8 = pneg %p861_p7 }
 0x5de   : > { %963 = dma.done.wait (%p862_p8), %s774_s2, 256  }
 0x5df   : > { %965 = vsyncadd (%p862_p8), %s774_s2, 4294967040  ;;  %s1262_s0 = sld [smem:[#allocation5_spill]]  ;;  %p23_p9 = scmp.ge.s32.totalorder %s1085_s14, 4  }
 0x5e0   : > { %s1263_s25 = smov %s972_s26  ;;  %s1264_s26 = smov %s976_s27 }
 0x5e1   : > { %s1266_s28 = smov %s1085_s14  ;;  %25 = sbr.rel (!%p23_p9) target bundleno = 7 (0x7), region = 107 }
 0x5e5   : > { %s1265_s27 = smov %s1262_s0 }
 0x5e6   :  { %780 = vsyncpa [#allocation3], 1 }
 0x5e7   :  { %782 = vsyncpa [#allocation3 + $0x1], 1 }

</bundles_post_ra>
